<compile_context>
chip_gen: v6e
topology: v6e:2x2x1
jax: 0.10.0
libtpu: 0.0.40
codegen_flags: <defaults>
</compile_context>

<pallas_src>
import jax
import jax.numpy as jnp
from jax.experimental import pallas as pl
from jax.experimental.pallas import tpu as pltpu


def _actor_critic_fused_kernel(x_ref, w1_ref, b1_ref, w2_ref, b2_ref, out_ref):
    """Fused forward for both MLP heads in two matmuls.

    h   = relu(x @ W1_cat + b1_cat)          # [TB, 2H]  (actor half | critic half)
    out = h @ W2_blockdiag + b2_cat          # [TB, OUT_PAD] packed slab
    """
    w1 = w1_ref[...]
    w2 = w2_ref[...]
    # Cast MXU operands to the (possibly bf16) weight dtype; accumulate fp32.
    x = x_ref[...].astype(w1.dtype)
    h = jnp.dot(x, w1, preferred_element_type=jnp.float32) + b1_ref[...]
    h = jnp.maximum(h, 0.0)              # dropout(eval)=identity, then ReLU (fp32 VPU)
    out = jnp.dot(h.astype(w2.dtype), w2,
                  preferred_element_type=jnp.float32) + b2_ref[...]
    out_ref[...] = out.astype(out_ref.dtype)


def pack_params(params, mxu_dtype=jnp.float32):
    """Pack the 8 per-head tensors into 4 arrays (done once, host-side).

    W1 = [W1a | W1c]                  : [D, 2H]
    W2 = blockdiag(W2a, W2c) padded   : [2H, OUT_PAD]   (OUT_PAD = A+1 rounded up to 8)
    b1 = [b1a | b1c]                  : [1, 2H]
    b2 = [b2a | b2c | 0...]           : [1, OUT_PAD]

    mxu_dtype=jnp.bfloat16 halves weight DMA/VMEM and runs full-rate on the
    bf16-native MXUs of v5e/v6e/v7x (fp32 accumulation kept in-kernel).
    """
    H = params["w1a"].shape[1]
    A = params["w2a"].shape[1]
    # Tight output slab: actor logits in lanes [0, A), value in lane A, pad to 8.
    out_pad = max(8, ((A + 1 + 7) // 8) * 8)

    w1 = jnp.concatenate([params["w1a"], params["w1c"]], axis=1)
    b1 = jnp.concatenate([params["b1a"], params["b1c"]], axis=1)

    w2 = jnp.zeros((2 * H, out_pad), jnp.float32)
    w2 = w2.at[:H, :A].set(params["w2a"])
    w2 = w2.at[H:, A:A + 1].set(params["w2c"])

    b2 = jnp.zeros((1, out_pad), jnp.float32)
    b2 = b2.at[:, :A].set(params["b2a"])
    b2 = b2.at[:, A:A + 1].set(params["b2c"])

    return (w1.astype(mxu_dtype), b1.astype(jnp.float32),
            w2.astype(mxu_dtype), b2.astype(jnp.float32), A)


def _choose_tb(B, block_b, min_steps):
    """Batch tile: full batch when tiny; otherwise >= min_steps grid steps
    (so v7x's 2 TCs both get >=2 steps) capped at block_b, multiple of 8."""
    if B <= max(64, 8 * min_steps):
        return B                                  # full-extent block (always legal)
    tb = min(block_b, pl.cdiv(B, min_steps))
    tb = ((tb + 7) // 8) * 8                      # sublane rule: multiple of 8
    return min(tb, block_b)


def actor_critic_forward(state, packed, *, block_b=4096, min_steps=4):
    """Run the fused kernel.

    Returns the packed output slab [B, OUT_PAD] (actor logits in lanes [0, A),
    value in lane A). Use split_action_value(out, A) to view the two heads;
    returning the slab avoids extra HBM copies for the slices.
    """
    w1, b1, w2, b2, A = packed
    B, D = state.shape
    H2 = w1.shape[1]
    OUT_PAD = w2.shape[1]

    TB = _choose_tb(B, block_b, min_steps)
    grid = (pl.cdiv(B, TB),)

    itemsize_w = jnp.dtype(w1.dtype).itemsize
    cost = pl.CostEstimate(
        flops=2 * B * (D * H2 + H2 * OUT_PAD),
        transcendentals=0,
        bytes_accessed=(B * (D + OUT_PAD) * 4
                        + (D * H2 + H2 + H2 * OUT_PAD + OUT_PAD) * itemsize_w),
    )

    out = pl.pallas_call(
        _actor_critic_fused_kernel,
        out_shape=jax.ShapeDtypeStruct((B, OUT_PAD), jnp.float32),
        grid=grid,
        in_specs=[
            pl.BlockSpec((TB, D), lambda i: (i, 0)),        # x: tiled over batch
            pl.BlockSpec((D, H2), lambda i: (0, 0)),        # W1: resident
            pl.BlockSpec((1, H2), lambda i: (0, 0)),        # b1: resident
            pl.BlockSpec((H2, OUT_PAD), lambda i: (0, 0)),  # W2: resident
            pl.BlockSpec((1, OUT_PAD), lambda i: (0, 0)),   # b2: resident
        ],
        out_specs=pl.BlockSpec((TB, OUT_PAD), lambda i: (i, 0)),
        compiler_params=pltpu.CompilerParams(
            dimension_semantics=("parallel",),   # batch axis shards across v7x's 2 TCs
        ),
        cost_estimate=cost,
    )(state, w1, b1, w2, b2)

    return out


def split_action_value(out_slab, A):
    """Cheap views into the packed slab (negligible copies at OUT_PAD=8)."""
    return out_slab[:, :A], out_slab[:, A:A + 1]


def init_linear(key, fan_in, fan_out):
    """Deterministic init mimicking torch.nn.Linear (uniform +/- 1/sqrt(fan_in)).

    Returns W with shape [fan_in, fan_out] (transposed vs. torch) and b [1, fan_out].
    """
    kw, kb = jax.random.split(key)
    bound = 1.0 / jnp.sqrt(float(fan_in))
    w = jax.random.uniform(kw, (fan_in, fan_out), jnp.float32, -bound, bound)
    b = jax.random.uniform(kb, (1, fan_out), jnp.float32, -bound, bound)
    return w, b


def init_actor_critic(key, input_dim, hidden_dim, output_dim):
    k1, k2, k3, k4 = jax.random.split(key, 4)
    w1a, b1a = init_linear(k1, input_dim, hidden_dim)   # actor fc_1
    w2a, b2a = init_linear(k2, hidden_dim, output_dim)  # actor fc_2
    w1c, b1c = init_linear(k3, input_dim, hidden_dim)   # critic fc_1
    w2c, b2c = init_linear(k4, hidden_dim, 1)           # critic fc_2
    return dict(w1a=w1a, b1a=b1a, w2a=w2a, b2a=b2a,
                w1c=w1c, b1c=b1c, w2c=w2c, b2c=b2c)


def _reference_forward(state, p):
    """Pure-JAX reference for correctness check (eval-mode MLP)."""
    h_a = jnp.maximum(state @ p["w1a"] + p["b1a"], 0.0)
    act = h_a @ p["w2a"] + p["b2a"]
    h_c = jnp.maximum(state @ p["w1c"] + p["b1c"], 0.0)
    val = h_c @ p["w2c"] + p["b2c"]
    return act, val


if __name__ == "__main__":
    # Small shapes consistent with the Snake-PPO MLPs.
    batch, input_dim, hidden_dim, output_dim = 8, 16, 32, 4

    key = jax.random.PRNGKey(0)
    k_state, k_params, k_big = jax.random.split(key, 3)

    state = jax.random.normal(k_state, (batch, input_dim), jnp.float32)
    params = init_actor_critic(k_params, input_dim, hidden_dim, output_dim)

    # --- fp32 path (default): must match the pure-JAX reference tightly ---
    packed_f32 = pack_params(params, mxu_dtype=jnp.float32)
    out_slab = actor_critic_forward(state, packed_f32)
    jax.block_until_ready(out_slab)
    action_pred, value_pred = split_action_value(out_slab, packed_f32[-1])

    ref_act, ref_val = _reference_forward(state, params)
    assert action_pred.shape == (batch, output_dim)
    assert value_pred.shape == (batch, 1)
    assert jnp.allclose(action_pred, ref_act, atol=1e-5, rtol=1e-5)
    assert jnp.allclose(value_pred, ref_val, atol=1e-5, rtol=1e-5)

    # --- larger batch exercises the batch grid (4 parallel tiles of 256) ---
    big_B = 1024
    big_state = jax.random.normal(k_big, (big_B, input_dim), jnp.float32)
    big_slab = actor_critic_forward(big_state, packed_f32)
    jax.block_until_ready(big_slab)
    big_act, big_val = split_action_value(big_slab, packed_f32[-1])
    ref_big_act, ref_big_val = _reference_forward(big_state, params)
    assert big_act.shape == (big_B, output_dim)
    assert big_val.shape == (big_B, 1)
    assert jnp.allclose(big_act, ref_big_act, atol=1e-4, rtol=1e-4)
    assert jnp.allclose(big_val, ref_big_val, atol=1e-4, rtol=1e-4)

    # --- optional bf16-MXU path (full-rate MXU on v5e/v6e/v7x); looser tol.
    # Note: activations are also cast to bf16 in-kernel, so input quantization
    # error compounds with weight quantization (documented for PPO logit use).
    packed_bf16 = pack_params(params, mxu_dtype=jnp.bfloat16)
    bf16_slab = actor_critic_forward(big_state, packed_bf16)
    jax.block_until_ready(bf16_slab)
    act_bf16, val_bf16 = split_action_value(bf16_slab, packed_bf16[-1])
    assert jnp.allclose(act_bf16, ref_big_act, atol=5e-2, rtol=5e-2)
    assert jnp.allclose(val_bf16, ref_big_val, atol=5e-2, rtol=5e-2)

    print("KERNEL_OK")
</pallas_src>

<mosaic_0001>
module attributes {stable_mosaic.version = 11 : i64} {
  func.func @_actor_critic_fused_kernel(%arg0: i32, %arg1: memref<8x16xf32, #tpu.memory_space<vmem>>, %arg2: memref<16x64xf32, #tpu.memory_space<vmem>>, %arg3: memref<1x64xf32, #tpu.memory_space<vmem>>, %arg4: memref<64x8xf32, #tpu.memory_space<vmem>>, %arg5: memref<1x8xf32, #tpu.memory_space<vmem>>, %arg6: memref<8x8xf32, #tpu.memory_space<vmem>>) attributes {dimension_semantics = [#tpu.dimension_semantics<parallel>], iteration_bounds = array<i64: 1>, scalar_prefetch = 0 : i64, scratch_operands = 0 : i64, tpu.core_type = #tpu.core_type<tc>, window_params = [{transform_indices = @transform_0, window_bounds = array<i64: 8, 16>}, {pipeline_mode = #tpu.pipeline_mode<synchronous>, transform_indices = @transform_1, window_bounds = array<i64: 16, 64>}, {pipeline_mode = #tpu.pipeline_mode<synchronous>, transform_indices = @transform_2, window_bounds = array<i64: 1, 64>}, {pipeline_mode = #tpu.pipeline_mode<synchronous>, transform_indices = @transform_3, window_bounds = array<i64: 64, 8>}, {pipeline_mode = #tpu.pipeline_mode<synchronous>, transform_indices = @transform_4, window_bounds = array<i64: 1, 8>}, {transform_indices = @transform_5, window_bounds = array<i64: 8, 8>}]} {
    %c0 = arith.constant 0 : index
    %c0_0 = arith.constant 0 : index
    %0 = vector.load %arg2[%c0, %c0_0] : memref<16x64xf32, #tpu.memory_space<vmem>>, vector<16x64xf32>
    %c0_1 = arith.constant 0 : index
    %c0_2 = arith.constant 0 : index
    %1 = vector.load %arg4[%c0_1, %c0_2] : memref<64x8xf32, #tpu.memory_space<vmem>>, vector<64x8xf32>
    %c0_3 = arith.constant 0 : index
    %c0_4 = arith.constant 0 : index
    %2 = vector.load %arg1[%c0_3, %c0_4] : memref<8x16xf32, #tpu.memory_space<vmem>>, vector<8x16xf32>
    %cst = arith.constant dense<0.000000e+00> : vector<8x64xf32>
    %3 = tpu.matmul %2, %0, %cst {dimension_numbers = #tpu.dot_dimension_numbers<[1], [0], [0], [1], [0, 0, 1, 1], [], []>} : vector<8x16xf32>, vector<16x64xf32>, vector<8x64xf32> -> vector<8x64xf32>
    %c0_5 = arith.constant 0 : index
    %c0_6 = arith.constant 0 : index
    %4 = vector.load %arg3[%c0_5, %c0_6] : memref<1x64xf32, #tpu.memory_space<vmem>>, vector<1x64xf32>
    %5 = vector.broadcast %4 : vector<1x64xf32> to vector<8x64xf32>
    %6 = arith.addf %3, %5 : vector<8x64xf32>
    %cst_7 = arith.constant 0.000000e+00 : f32
    %7 = vector.broadcast %cst_7 : f32 to vector<8x64xf32>
    %8 = arith.maximumf %6, %7 : vector<8x64xf32>
    %cst_8 = arith.constant dense<0.000000e+00> : vector<8x8xf32>
    %9 = tpu.matmul %8, %1, %cst_8 {dimension_numbers = #tpu.dot_dimension_numbers<[1], [0], [0], [1], [0, 0, 1, 1], [], []>} : vector<8x64xf32>, vector<64x8xf32>, vector<8x8xf32> -> vector<8x8xf32>
    %c0_9 = arith.constant 0 : index
    %c0_10 = arith.constant 0 : index
    %10 = vector.load %arg5[%c0_9, %c0_10] : memref<1x8xf32, #tpu.memory_space<vmem>>, vector<1x8xf32>
    %11 = vector.broadcast %10 : vector<1x8xf32> to vector<8x8xf32>
    %12 = arith.addf %9, %11 : vector<8x8xf32>
    %c0_11 = arith.constant 0 : index
    %c0_12 = arith.constant 0 : index
    %13 = vector.load %arg6[%c0_11, %c0_12] : memref<8x8xf32, #tpu.memory_space<vmem>>, vector<8x8xf32>
    tpu.vector_store %arg6[%c0_11, %c0_12], %12 {strides = array<i32>} : memref<8x8xf32, #tpu.memory_space<vmem>>, vector<8x8xf32>,
    return
  }
  func.func @transform_0(%arg0: i32) -> (i32, i32) {
    %c0_i32 = arith.constant 0 : i32
    %c0_i32_0 = arith.constant 0 : i32
    return %arg0, %c0_i32 : i32, i32
  }
  func.func @transform_1(%arg0: i32) -> (i32, i32) {
    %c0_i32 = arith.constant 0 : i32
    %c0_i32_0 = arith.constant 0 : i32
    %c0_i32_1 = arith.constant 0 : i32
    return %c0_i32, %c0_i32_0 : i32, i32
  }
  func.func @transform_2(%arg0: i32) -> (i32, i32) {
    %c0_i32 = arith.constant 0 : i32
    %c0_i32_0 = arith.constant 0 : i32
    %c0_i32_1 = arith.constant 0 : i32
    return %c0_i32, %c0_i32_0 : i32, i32
  }
  func.func @transform_3(%arg0: i32) -> (i32, i32) {
    %c0_i32 = arith.constant 0 : i32
    %c0_i32_0 = arith.constant 0 : i32
    %c0_i32_1 = arith.constant 0 : i32
    return %c0_i32, %c0_i32_0 : i32, i32
  }
  func.func @transform_4(%arg0: i32) -> (i32, i32) {
    %c0_i32 = arith.constant 0 : i32
    %c0_i32_0 = arith.constant 0 : i32
    %c0_i32_1 = arith.constant 0 : i32
    return %c0_i32, %c0_i32_0 : i32, i32
  }
  func.func @transform_5(%arg0: i32) -> (i32, i32) {
    %c0_i32 = arith.constant 0 : i32
    %c0_i32_0 = arith.constant 0 : i32
    return %arg0, %c0_i32 : i32, i32
  }
}

</mosaic_0001>

<bundles_post_ra>
// kernel: tpu_custom_call.1
= control target key start
LH: loop header
LB: loop body
LE: loop exit
PB: predicated region body
PF: predicated region fallthrough
CT: control target
= control target key end

     0   :  { %v278_v1 = vmov 0.0   ;;  %vm279_vm0 = vmmov 0   ;;  %vm39_vm1 = vcmask 130048   ;;  %s355_s0 = inlined_call_operand.vmem [shape: f32[8,16], index: 0, kind: input, shape index: {}]   ;;  %s356_s1 = inlined_call_operand.vmem [shape: f32[16,64], index: 1, kind: input, shape index: {}]   ;;  %s357_s2 = inlined_call_operand.vmem [shape: f32[1,64], index: 2, kind: input, shape index: {}]   ;;  %s358_s3 = inlined_call_operand.vmem [shape: f32[64,8], index: 3, kind: input, shape index: {}]   ;;  %s359_s4 = inlined_call_operand.vmem [shape: f32[1,8], index: 4, kind: input, shape index: {}]   ;;  %s360_s5 = inlined_call_operand.hbm [shape: f32[8,8], index: 5, kind: output, shape index: {}]  }
   0x1   :  { %v22_v0 = vld [vmem:[%s356_s1 + $0x8] sm:$0xff]  ;;  %227 = vmatprep.subr.mxu0 %v278_v1  ;;  %v21_v2 = vld [vmem:[%s356_s1] sm:$0xff]  ;;  %231 = vmatprep.mubr.msk.f32.mxu0 %vm279_vm0, %v278_v1  ;;  %v30_v3 = vld [vmem:[%s358_s3 + $0x38] sm:$0xff] }
   0x2   :  { %228 = vmatpush3.msra.mxu0 %v22_v0  ;;  %v31_v4 = vld [vmem:[%s355_s0] sm:$0xff]  ;;  %234 = vmatprep.subr.mxu1 %v278_v1  ;;  %v29_v5 = vld [vmem:[%s358_s3 + $0x30] sm:$0xff] }
   0x3   :  { %229 = vmatprep.subr.mxu0 %v278_v1  ;;  %235 = vmatpush3.msra.mxu1 %v30_v3 }
   0x4   :  { %10 = vsyncpa [#allocation3], 0  ;;  %230 = vmatpush3.msra.mxu0 %v21_v2  ;;  %236 = vmatprep.subr.mxu1 %v278_v1  ;;  %v28_v6 = vld [vmem:[%s358_s3 + $0x28] sm:$0xff]  ;;  %v27_v7 = vld [vmem:[%s358_s3 + $0x20] sm:$0xff]  ;;  %vm121_vm2 = vcmask 523264   ;;  %s280_s17 = smov [#allocation2]  }
   0x5   :  { %232 = vmatmul.mubr.msk.f32.vlgmr.msra.gmra.mxu0 %vm39_vm1, %v31_v4  ;;  %237 = vmatpush3.msra.mxu1 %v29_v5  ;;  %v26_v8 = vld [vmem:[%s358_s3 + $0x18] sm:$0xff]  ;;  %v25_v9 = vld [vmem:[%s358_s3 + $0x10] sm:$0xff]  ;;  %v24_v10 = vld [vmem:[%s358_s3 + $0x8] sm:$0xff]  ;;  %s203_s18 = sshll.u32 %s280_s17, 4  ;;  %vm195_vm3 = vcmask 64512   ;;  %s204_s18 = int_to_ptr.vmem [resolvable:$true] %s203_s18 }
   0x6   :  { %238 = vmatprep.subr.mxu1 %v278_v1  ;;  %250 = vmatprep.mubr.msk.f32.mxu1 %vm279_vm0, %v278_v1  ;;  %v23_v11 = vld [vmem:[%s358_s3] sm:$0xff]  ;;  %s256_s3 = scalar_lea.vmem %s204_s18, 128  ;;  %p261_p1 = scmp.lt.s32.totalorder %s204_s18, %s204_s18 }
   0x7   :  { %239 = vmatpush3.msra.mxu1 %v28_v6  ;;  %v211_v12 = vld [vmem:[%s357_s2] ss:$0 sm:$0xff]  ;;  %p257_p0 = scmp.ne.s32.totalorder %s204_s18, %s256_s3  ;;  %p262_p2 = scmp.lt.s32.totalorder %s256_s3, %s256_s3 }
   0x8   :  { %240 = vmatprep.subr.mxu1 %v278_v1  ;;  %v213_v17 = vld [vmem:[%s359_s4] ss:$0 sm:$0xff] }
   0x9   :  { %241 = vmatpush3.msra.mxu1 %v27_v7  ;;  %p263_p3 = por %p262_p2, %p261_p1 }
   0xa   :  { %242 = vmatprep.subr.mxu1 %v278_v1 }
   0xb   :  { %243 = vmatpush3.msra.mxu1 %v26_v8  ;;  %p264_p4 = pnand %p263_p3, %p257_p0 }
   0xc   :  { %244 = vmatprep.subr.mxu1 %v278_v1 }
   0xd   :  { %245 = vmatpush3.msra.mxu1 %v25_v9 }
   0xe   :  { %246 = vmatprep.subr.mxu1 %v278_v1 }
   0xf   :  { %247 = vmatpush3.msra.mxu1 %v24_v10 }
  0x10   :  { %248 = vmatprep.subr.mxu1 %v278_v1 }
  0x11   :  { %249 = vmatpush3.msra.mxu1 %v23_v11 }
  0xc5   :  { %v109_v13 = vpop.f32.mrf.mxu0 }
  0xc6   :  { %v110_v14 = vadd.f32 %v211_v12, %v109_v13 }
  0xc7   :  { %v233_v15 = vpop.f32.mrf.mxu0 }
  0xc8   :  { %v113_v16 = vmax.f32 %v110_v14, 0.0 }
  0xca   :  { %251 = vmatmul.mubr.msk.f32.vlgmr.msra.gmra.mxu1 %vm121_vm2, %v113_v16 }
 0x18a   :  { %v191_v18 = vpop.f32.mrf.mxu1 }
 0x18b   :  { %v192_v19 = vadd.f32 %v213_v17, %v191_v18 }
 0x18c   :  { %v252_v20 = vpop.f32.mrf.mxu1 }
 0x18d   :  { %196 = vst.msk [vmem:[#allocation2] sm:$0xff] %vm195_vm3, %v192_v19 }
 0x18e   :  { %267 = shalt.err (!%p264_p4)
}
 0x18f   :  { %206 = dma.vmem_to_hbm [thread:$0]  %s204_s18, 128, %s360_s5, [#allocation3]  }
 0x190   :  { %276 = dma.done.wait [#allocation3], 128  }
 0x191   :  { %277 = vsyncadd [#allocation3], 4294967168 }
 0x192   :  { %210 = vsyncpa [#allocation3], 1 }

</bundles_post_ra>
